<compile_context>
chip_gen: v6e
topology: v6e:2x2x1
jax: 0.10.0
libtpu: 0.0.40
codegen_flags: <defaults>
</compile_context>

<pallas_src>
import functools

import jax
import jax.numpy as jnp
from jax import lax
from jax.experimental import pallas as pl
from jax.experimental.pallas import tpu as pltpu

EPS = 1e-5  # nn.InstanceNorm2d default eps (affine=False -> no scale/shift)

# (oy, ox) offsets in the order k = (oy+1)*3 + (ox+1) == (ky*3 + kx)
_OFFSETS = tuple((oy, ox) for oy in (-1, 0, 1) for ox in (-1, 0, 1))


def _instance_norm(y, inv_hw):
    """InstanceNorm2d (affine=False) over the flattened spatial (lane) axis.

    Two-pass mean/variance in f32 (robust to large post-conv means)."""
    mean = jnp.sum(y, axis=-1, keepdims=True) * inv_hw
    d = y - mean
    var = jnp.sum(d * d, axis=-1, keepdims=True) * inv_hw
    return d * lax.rsqrt(var + EPS)


def _block_kernel(mask_ref, x_ref, w1_ref, w2_ref, o_ref, patch_ref,
                  *, W, HW, B, C, CP):
    L = B * HW
    inv_hw = 1.0 / float(HW)

    # Zero the patch scratch once per grid step so the sublane padding rows
    # [k*CP + C, (k+1)*CP) contribute exactly 0 to the fused dot.  Done every
    # step (not under program_id==0): scratch is per-core under megacore
    # partitioning, so a step-0 guard could leave one core uninitialized.
    if CP != C:
        patch_ref[...] = jnp.zeros_like(patch_ref)

    def conv3x3(z, w_ref):
        # z: (C, L) activation slab (B images lane-concatenated).
        # A 3x3 tap is a flat-index shift by s = oy*W + ox: produce it with an
        # XLU lane rotation of the in-register slab, then zero every position
        # where the shift would cross the implicit zero padding or the
        # neighbouring image (the host-built masks cover both cases).
        for k, (oy, ox) in enumerate(_OFFSETS):
            s = oy * W + ox
            if s == 0:
                tap = z                                   # centre tap, no mask
            else:
                tap = pltpu.roll(z, (-s) % L, 1) * mask_ref[k:k + 1, :]
            patch_ref[k * CP:k * CP + C, :] = tap.astype(patch_ref.dtype)
        # Single fused im2col contraction: (Cout, 9*CP) @ (9*CP, B*HW).
        return jnp.dot(w_ref[...], patch_ref[...],
                       preferred_element_type=jnp.float32)

    xs = [x_ref[b] for b in range(B)]                 # (C, HW) each: identity
    x_cat = xs[0] if B == 1 else jnp.concatenate(xs, axis=-1)

    # conv1 -> InstanceNorm -> ReLU   (conv biases dropped: InstanceNorm with
    # affine=False subtracts the per-channel mean, cancelling them exactly)
    y1 = conv3x3(x_cat, w1_ref)                        # (C, L) f32
    n1 = []
    for b in range(B):
        y1_b = y1 if B == 1 else y1[:, b * HW:(b + 1) * HW]
        n1.append(jnp.maximum(_instance_norm(y1_b, inv_hw), 0.0))
    n1_cat = n1[0] if B == 1 else jnp.concatenate(n1, axis=-1)

    # conv2 -> InstanceNorm -> (+ identity) -> ReLU
    y2 = conv3x3(n1_cat, w2_ref)                       # (C, L) f32
    for b in range(B):
        y2_b = y2 if B == 1 else y2[:, b * HW:(b + 1) * HW]
        out_b = jnp.maximum(_instance_norm(y2_b, inv_hw) + xs[b], 0.0)
        o_ref[b] = out_b.astype(o_ref.dtype)


def _flatten_weight(w_oihw, c_pad):
    """(Cout, Cin, 3, 3) OIHW -> (Cout, 9*c_pad), tap-major / channel-minor.

    The channel axis is zero-padded to the sublane-aligned width used by the
    patch scratch (column k*c_pad + ci matches patch row k*c_pad + ci)."""
    cout, cin = w_oihw.shape[:2]
    wt = jnp.transpose(w_oihw, (0, 2, 3, 1)).reshape(cout, 9, cin)
    if c_pad != cin:
        wt = jnp.pad(wt, ((0, 0), (0, 0), (0, c_pad - cin)))
    return wt.reshape(cout, 9 * c_pad)


def _tap_masks(H, W, B):
    """(9, B*H*W) f32 validity masks for the nine (oy, ox) taps, tiled per
    image.  Built host-side once (no per-step iota / integer-divide work)."""
    ii = jnp.arange(H * W, dtype=jnp.int32)
    yy, xx = ii // W, ii % W
    rows = []
    for oy, ox in _OFFSETS:
        rows.append((yy + oy >= 0) & (yy + oy < H) & (xx + ox >= 0) & (xx + ox < W))
    m = jnp.stack(rows).astype(jnp.float32)            # (9, H*W)
    return jnp.tile(m, (1, B))                         # (9, B*H*W)


def _pick_images_per_step(n, c, hw, c_pad):
    """Largest per-step batch that (a) divides N, (b) keeps >= 2 grid steps so
    both v7x TensorCores get work, and (c) keeps the per-step VMEM use small."""
    if n <= 2:
        return 1
    per_image = (9 * c_pad + 6 * c) * hw * 4           # patch + slabs, f32 bytes
    cap = max(1, (4 << 20) // max(per_image, 1))
    best = 1
    for b in range(2, min(n // 2, cap) + 1):
        if n % b == 0:
            best = b
    return best


def block_forward(x_nchw, w1_oihw, b1, w2_oihw, b2, *,
                  images_per_step=None, compute_dtype=jnp.float32):
    """Forward pass of `Block` (identity_downsample=None, stride=1).

    x_nchw: (N, C, H, W) f32; conv weights in PyTorch OIHW layout; biases (C,).
    compute_dtype=jnp.bfloat16 stages matmul operands in bf16 (v6e/v7x MXU fast
    path); default f32 matches the PyTorch module to ~1e-4.
    """
    del b1, b2   # exactly cancelled by the following InstanceNorm(affine=False)
    N, C, H, W = x_nchw.shape
    Cout, Cin, KH, KW = w1_oihw.shape
    assert (Cin, KH, KW) == (C, 3, 3) and Cout == C, \
        "no identity_downsample / stride=1 -> Cin == Cout, 3x3 kernel"
    HW = H * W
    CP = -(-C // 8) * 8                                # channels padded to a sublane tile
    B = images_per_step or _pick_images_per_step(N, C, HW, CP)
    assert N % B == 0, "images_per_step must divide the batch"
    L = B * HW
    # TODO(synk): if H*W is not a multiple of 128, pad the flattened spatial
    # axis (and extend the masks) so output stores stay lane-dense.

    x_flat = x_nchw.reshape(N, C, HW).astype(jnp.float32)
    w1f = _flatten_weight(w1_oihw, CP).astype(compute_dtype)
    w2f = _flatten_weight(w2_oihw, CP).astype(compute_dtype)
    masks = _tap_masks(H, W, B)

    kernel = functools.partial(_block_kernel, W=W, HW=HW, B=B, C=C, CP=CP)

    out_flat = pl.pallas_call(
        kernel,
        out_shape=jax.ShapeDtypeStruct((N, Cout, HW), jnp.float32),
        grid_spec=pltpu.PrefetchScalarGridSpec(
            num_scalar_prefetch=0,
            grid=(N // B,),
            in_specs=[
                pl.BlockSpec((9, L), lambda n: (0, 0)),           # tap masks (resident)
                pl.BlockSpec((B, C, HW), lambda n: (n, 0, 0)),    # activations + identity
                pl.BlockSpec((Cout, 9 * CP), lambda n: (0, 0)),   # w1 (resident)
                pl.BlockSpec((Cout, 9 * CP), lambda n: (0, 0)),   # w2 (resident)
            ],
            out_specs=pl.BlockSpec((B, Cout, HW), lambda n: (n, 0, 0)),
            scratch_shapes=[pltpu.VMEM((9 * CP, L), compute_dtype)],  # im2col patches
        ),
        compiler_params=pltpu.CompilerParams(
            dimension_semantics=("parallel",),
            vmem_limit_bytes=32 * 1024 * 1024),
    )(masks, x_flat, w1f, w2f)

    return out_flat.reshape(N, Cout, H, W)


def _reference_block(x_nchw, w1_oihw, b1, w2_oihw, b2):
    """Pure-JAX (XLA) reference in NCHW, matching PyTorch semantics."""
    def conv(x, w, b):
        y = lax.conv_general_dilated(
            x, w, window_strides=(1, 1), padding=((1, 1), (1, 1)),
            dimension_numbers=("NCHW", "OIHW", "NCHW"))
        return y + b.reshape(1, -1, 1, 1)

    def inorm(y):
        m = jnp.mean(y, axis=(2, 3), keepdims=True)
        v = jnp.mean((y - m) ** 2, axis=(2, 3), keepdims=True)
        return (y - m) * lax.rsqrt(v + EPS)

    y = jnp.maximum(inorm(conv(x_nchw, w1_oihw, b1)), 0.0)
    y = inorm(conv(y, w2_oihw, b2))
    return jnp.maximum(y + x_nchw, 0.0)


if __name__ == "__main__":
    # Small shapes: batch=2, channels=4, spatial=16x16 (NCHW, PyTorch-style).
    N, C, H, W = 2, 4, 16, 16

    key = jax.random.PRNGKey(0)
    kx, kw1, kb1, kw2, kb2, kx4 = jax.random.split(key, 6)

    x = jax.random.normal(kx, (N, C, H, W), jnp.float32)
    w1 = jax.random.normal(kw1, (C, C, 3, 3), jnp.float32) * 0.1   # OIHW
    b1 = jax.random.normal(kb1, (C,), jnp.float32) * 0.1
    w2 = jax.random.normal(kw2, (C, C, 3, 3), jnp.float32) * 0.1
    b2 = jax.random.normal(kb2, (C,), jnp.float32) * 0.1

    # Primary case: N=2 -> 1 image per step, grid of 2 parallel steps.
    out = jax.block_until_ready(block_forward(x, w1, b1, w2, b2))
    ref = jax.block_until_ready(_reference_block(x, w1, b1, w2, b2))
    assert out.shape == (N, C, H, W)
    err = float(jnp.max(jnp.abs(out - ref)))
    assert err < 1e-4, f"mismatch vs XLA reference (B=1 path): {err}"

    # Also exercise the multi-image-per-grid-step path: N=4 -> 2 images/step.
    x4 = jax.random.normal(kx4, (4, C, H, W), jnp.float32)
    out4 = jax.block_until_ready(block_forward(x4, w1, b1, w2, b2))
    ref4 = jax.block_until_ready(_reference_block(x4, w1, b1, w2, b2))
    err4 = float(jnp.max(jnp.abs(out4 - ref4)))
    assert err4 < 1e-4, f"mismatch vs XLA reference (B=2 path): {err4}"

    print("KERNEL_OK")
</pallas_src>

<mosaic_0001>
module attributes {stable_mosaic.version = 11 : i64} {
  func.func @_block_kernel(%arg0: i32, %arg1: memref<9x256xf32, #tpu.memory_space<vmem>>, %arg2: memref<1x4x256xf32, #tpu.memory_space<vmem>>, %arg3: memref<4x72xf32, #tpu.memory_space<vmem>>, %arg4: memref<4x72xf32, #tpu.memory_space<vmem>>, %arg5: memref<1x4x256xf32, #tpu.memory_space<vmem>>, %arg6: memref<72x256xf32, #tpu.memory_space<vmem>>) attributes {dimension_semantics = [#tpu.dimension_semantics<parallel>], iteration_bounds = array<i64: 2>, scalar_prefetch = 0 : i64, scratch_operands = 1 : i64, tpu.core_type = #tpu.core_type<tc>, window_params = [{pipeline_mode = #tpu.pipeline_mode<synchronous>, transform_indices = @transform_0, window_bounds = array<i64: 9, 256>}, {transform_indices = @transform_1, window_bounds = array<i64: 1, 4, 256>}, {pipeline_mode = #tpu.pipeline_mode<synchronous>, transform_indices = @transform_2, window_bounds = array<i64: 4, 72>}, {pipeline_mode = #tpu.pipeline_mode<synchronous>, transform_indices = @transform_3, window_bounds = array<i64: 4, 72>}, {transform_indices = @transform_4, window_bounds = array<i64: 1, 4, 256>}]} {
    %cst = arith.constant 0.000000e+00 : f32
    %0 = vector.broadcast %cst : f32 to vector<72x256xf32>
    %c0 = arith.constant 0 : index
    %c0_0 = arith.constant 0 : index
    %1 = vector.load %arg6[%c0, %c0_0] : memref<72x256xf32, #tpu.memory_space<vmem>>, vector<72x256xf32>
    tpu.vector_store %arg6[%c0, %c0_0], %0 {strides = array<i32>} : memref<72x256xf32, #tpu.memory_space<vmem>>, vector<72x256xf32>,
    %c0_1 = arith.constant 0 : index
    %c0_2 = arith.constant 0 : index
    %c0_3 = arith.constant 0 : index
    %2 = vector.load %arg2[%c0_1, %c0_2, %c0_3] : memref<1x4x256xf32, #tpu.memory_space<vmem>>, vector<1x4x256xf32>
    %3 = vector.shape_cast %2 : vector<1x4x256xf32> to vector<4x256xf32>
    %c17_i32 = arith.constant 17 : i32
    %4 = tpu.dynamic_rotate %3 by %c17_i32 dim 1 : vector<4x256xf32>, i32 -> vector<4x256xf32>
    %c0_4 = arith.constant 0 : index
    %c0_5 = arith.constant 0 : index
    %5 = vector.load %arg1[%c0_4, %c0_5] : memref<9x256xf32, #tpu.memory_space<vmem>>, vector<1x256xf32>
    %6 = vector.broadcast %5 : vector<1x256xf32> to vector<4x256xf32>
    %7 = arith.mulf %4, %6 : vector<4x256xf32>
    %c0_6 = arith.constant 0 : index
    %c0_7 = arith.constant 0 : index
    %8 = vector.load %arg6[%c0_6, %c0_7] : memref<72x256xf32, #tpu.memory_space<vmem>>, vector<4x256xf32>
    tpu.vector_store %arg6[%c0_6, %c0_7], %7 {strides = array<i32>} : memref<72x256xf32, #tpu.memory_space<vmem>>, vector<4x256xf32>,
    %c16_i32 = arith.constant 16 : i32
    %9 = tpu.dynamic_rotate %3 by %c16_i32 dim 1 : vector<4x256xf32>, i32 -> vector<4x256xf32>
    %c1 = arith.constant 1 : index
    %c0_8 = arith.constant 0 : index
    %10 = vector.load %arg1[%c1, %c0_8] : memref<9x256xf32, #tpu.memory_space<vmem>>, vector<1x256xf32>
    %11 = vector.broadcast %10 : vector<1x256xf32> to vector<4x256xf32>
    %12 = arith.mulf %9, %11 : vector<4x256xf32>
    %c8 = arith.constant 8 : index
    %c0_9 = arith.constant 0 : index
    %13 = vector.load %arg6[%c8, %c0_9] : memref<72x256xf32, #tpu.memory_space<vmem>>, vector<4x256xf32>
    tpu.vector_store %arg6[%c8, %c0_9], %12 {strides = array<i32>} : memref<72x256xf32, #tpu.memory_space<vmem>>, vector<4x256xf32>,
    %c15_i32 = arith.constant 15 : i32
    %14 = tpu.dynamic_rotate %3 by %c15_i32 dim 1 : vector<4x256xf32>, i32 -> vector<4x256xf32>
    %c2 = arith.constant 2 : index
    %c0_10 = arith.constant 0 : index
    %15 = vector.load %arg1[%c2, %c0_10] : memref<9x256xf32, #tpu.memory_space<vmem>>, vector<1x256xf32>
    %16 = vector.broadcast %15 : vector<1x256xf32> to vector<4x256xf32>
    %17 = arith.mulf %14, %16 : vector<4x256xf32>
    %c16 = arith.constant 16 : index
    %c0_11 = arith.constant 0 : index
    %18 = vector.load %arg6[%c16, %c0_11] : memref<72x256xf32, #tpu.memory_space<vmem>>, vector<4x256xf32>
    tpu.vector_store %arg6[%c16, %c0_11], %17 {strides = array<i32>} : memref<72x256xf32, #tpu.memory_space<vmem>>, vector<4x256xf32>,
    %c1_i32 = arith.constant 1 : i32
    %19 = tpu.dynamic_rotate %3 by %c1_i32 dim 1 : vector<4x256xf32>, i32 -> vector<4x256xf32>
    %c3 = arith.constant 3 : index
    %c0_12 = arith.constant 0 : index
    %20 = vector.load %arg1[%c3, %c0_12] : memref<9x256xf32, #tpu.memory_space<vmem>>, vector<1x256xf32>
    %21 = vector.broadcast %20 : vector<1x256xf32> to vector<4x256xf32>
    %22 = arith.mulf %19, %21 : vector<4x256xf32>
    %c24 = arith.constant 24 : index
    %c0_13 = arith.constant 0 : index
    %23 = vector.load %arg6[%c24, %c0_13] : memref<72x256xf32, #tpu.memory_space<vmem>>, vector<4x256xf32>
    tpu.vector_store %arg6[%c24, %c0_13], %22 {strides = array<i32>} : memref<72x256xf32, #tpu.memory_space<vmem>>, vector<4x256xf32>,
    %c32 = arith.constant 32 : index
    %c0_14 = arith.constant 0 : index
    %24 = vector.load %arg6[%c32, %c0_14] : memref<72x256xf32, #tpu.memory_space<vmem>>, vector<4x256xf32>
    tpu.vector_store %arg6[%c32, %c0_14], %3 {strides = array<i32>} : memref<72x256xf32, #tpu.memory_space<vmem>>, vector<4x256xf32>,
    %c255_i32 = arith.constant 255 : i32
    %25 = tpu.dynamic_rotate %3 by %c255_i32 dim 1 : vector<4x256xf32>, i32 -> vector<4x256xf32>
    %c5 = arith.constant 5 : index
    %c0_15 = arith.constant 0 : index
    %26 = vector.load %arg1[%c5, %c0_15] : memref<9x256xf32, #tpu.memory_space<vmem>>, vector<1x256xf32>
    %27 = vector.broadcast %26 : vector<1x256xf32> to vector<4x256xf32>
    %28 = arith.mulf %25, %27 : vector<4x256xf32>
    %c40 = arith.constant 40 : index
    %c0_16 = arith.constant 0 : index
    %29 = vector.load %arg6[%c40, %c0_16] : memref<72x256xf32, #tpu.memory_space<vmem>>, vector<4x256xf32>
    tpu.vector_store %arg6[%c40, %c0_16], %28 {strides = array<i32>} : memref<72x256xf32, #tpu.memory_space<vmem>>, vector<4x256xf32>,
    %c241_i32 = arith.constant 241 : i32
    %30 = tpu.dynamic_rotate %3 by %c241_i32 dim 1 : vector<4x256xf32>, i32 -> vector<4x256xf32>
    %c6 = arith.constant 6 : index
    %c0_17 = arith.constant 0 : index
    %31 = vector.load %arg1[%c6, %c0_17] : memref<9x256xf32, #tpu.memory_space<vmem>>, vector<1x256xf32>
    %32 = vector.broadcast %31 : vector<1x256xf32> to vector<4x256xf32>
    %33 = arith.mulf %30, %32 : vector<4x256xf32>
    %c48 = arith.constant 48 : index
    %c0_18 = arith.constant 0 : index
    %34 = vector.load %arg6[%c48, %c0_18] : memref<72x256xf32, #tpu.memory_space<vmem>>, vector<4x256xf32>
    tpu.vector_store %arg6[%c48, %c0_18], %33 {strides = array<i32>} : memref<72x256xf32, #tpu.memory_space<vmem>>, vector<4x256xf32>,
    %c240_i32 = arith.constant 240 : i32
    %35 = tpu.dynamic_rotate %3 by %c240_i32 dim 1 : vector<4x256xf32>, i32 -> vector<4x256xf32>
    %c7 = arith.constant 7 : index
    %c0_19 = arith.constant 0 : index
    %36 = vector.load %arg1[%c7, %c0_19] : memref<9x256xf32, #tpu.memory_space<vmem>>, vector<1x256xf32>
    %37 = vector.broadcast %36 : vector<1x256xf32> to vector<4x256xf32>
    %38 = arith.mulf %35, %37 : vector<4x256xf32>
    %c56 = arith.constant 56 : index
    %c0_20 = arith.constant 0 : index
    %39 = vector.load %arg6[%c56, %c0_20] : memref<72x256xf32, #tpu.memory_space<vmem>>, vector<4x256xf32>
    tpu.vector_store %arg6[%c56, %c0_20], %38 {strides = array<i32>} : memref<72x256xf32, #tpu.memory_space<vmem>>, vector<4x256xf32>,
    %c239_i32 = arith.constant 239 : i32
    %40 = tpu.dynamic_rotate %3 by %c239_i32 dim 1 : vector<4x256xf32>, i32 -> vector<4x256xf32>
    %c8_21 = arith.constant 8 : index
    %c0_22 = arith.constant 0 : index
    %41 = vector.load %arg1[%c8_21, %c0_22] : memref<9x256xf32, #tpu.memory_space<vmem>>, vector<1x256xf32>
    %42 = vector.broadcast %41 : vector<1x256xf32> to vector<4x256xf32>
    %43 = arith.mulf %40, %42 : vector<4x256xf32>
    %c64 = arith.constant 64 : index
    %c0_23 = arith.constant 0 : index
    %44 = vector.load %arg6[%c64, %c0_23] : memref<72x256xf32, #tpu.memory_space<vmem>>, vector<4x256xf32>
    tpu.vector_store %arg6[%c64, %c0_23], %43 {strides = array<i32>} : memref<72x256xf32, #tpu.memory_space<vmem>>, vector<4x256xf32>,
    %c0_24 = arith.constant 0 : index
    %c0_25 = arith.constant 0 : index
    %45 = vector.load %arg3[%c0_24, %c0_25] : memref<4x72xf32, #tpu.memory_space<vmem>>, vector<4x72xf32>
    %c0_26 = arith.constant 0 : index
    %c0_27 = arith.constant 0 : index
    %46 = vector.load %arg6[%c0_26, %c0_27] : memref<72x256xf32, #tpu.memory_space<vmem>>, vector<72x256xf32>
    %cst_28 = arith.constant dense<0.000000e+00> : vector<4x256xf32>
    %47 = tpu.matmul %45, %46, %cst_28 {dimension_numbers = #tpu.dot_dimension_numbers<[1], [0], [0], [1], [0, 0, 1, 1], [], []>} : vector<4x72xf32>, vector<72x256xf32>, vector<4x256xf32> -> vector<4x256xf32>
    %cst_29 = arith.constant dense<0.000000e+00> : vector<4xf32>
    %48 = vector.multi_reduction <add>, %47, %cst_29 [1] : vector<4x256xf32> to vector<4xf32>
    %49 = vector.shape_cast %48 : vector<4xf32> to vector<4x1xf32>
    %cst_30 = arith.constant 3.906250e-03 : f32
    %50 = vector.broadcast %cst_30 : f32 to vector<4x1xf32>
    %51 = arith.mulf %49, %50 : vector<4x1xf32>
    %52 = vector.broadcast %51 : vector<4x1xf32> to vector<4x256xf32>
    %53 = arith.subf %47, %52 : vector<4x256xf32>
    %54 = arith.mulf %53, %53 : vector<4x256xf32>
    %cst_31 = arith.constant dense<0.000000e+00> : vector<4xf32>
    %55 = vector.multi_reduction <add>, %54, %cst_31 [1] : vector<4x256xf32> to vector<4xf32>
    %56 = vector.shape_cast %55 : vector<4xf32> to vector<4x1xf32>
    %cst_32 = arith.constant 3.906250e-03 : f32
    %57 = vector.broadcast %cst_32 : f32 to vector<4x1xf32>
    %58 = arith.mulf %56, %57 : vector<4x1xf32>
    %cst_33 = arith.constant 9.99999974E-6 : f32
    %59 = vector.broadcast %cst_33 : f32 to vector<4x1xf32>
    %60 = arith.addf %58, %59 : vector<4x1xf32>
    %61 = math.rsqrt %60 : vector<4x1xf32>
    %62 = vector.broadcast %61 : vector<4x1xf32> to vector<4x256xf32>
    %63 = arith.mulf %53, %62 : vector<4x256xf32>
    %cst_34 = arith.constant 0.000000e+00 : f32
    %64 = vector.broadcast %cst_34 : f32 to vector<4x256xf32>
    %65 = arith.maximumf %63, %64 : vector<4x256xf32>
    %c17_i32_35 = arith.constant 17 : i32
    %66 = tpu.dynamic_rotate %65 by %c17_i32_35 dim 1 : vector<4x256xf32>, i32 -> vector<4x256xf32>
    %c0_36 = arith.constant 0 : index
    %c0_37 = arith.constant 0 : index
    %67 = vector.load %arg1[%c0_36, %c0_37] : memref<9x256xf32, #tpu.memory_space<vmem>>, vector<1x256xf32>
    %68 = vector.broadcast %67 : vector<1x256xf32> to vector<4x256xf32>
    %69 = arith.mulf %66, %68 : vector<4x256xf32>
    %c0_38 = arith.constant 0 : index
    %c0_39 = arith.constant 0 : index
    %70 = vector.load %arg6[%c0_38, %c0_39] : memref<72x256xf32, #tpu.memory_space<vmem>>, vector<4x256xf32>
    tpu.vector_store %arg6[%c0_38, %c0_39], %69 {strides = array<i32>} : memref<72x256xf32, #tpu.memory_space<vmem>>, vector<4x256xf32>,
    %c16_i32_40 = arith.constant 16 : i32
    %71 = tpu.dynamic_rotate %65 by %c16_i32_40 dim 1 : vector<4x256xf32>, i32 -> vector<4x256xf32>
    %c1_41 = arith.constant 1 : index
    %c0_42 = arith.constant 0 : index
    %72 = vector.load %arg1[%c1_41, %c0_42] : memref<9x256xf32, #tpu.memory_space<vmem>>, vector<1x256xf32>
    %73 = vector.broadcast %72 : vector<1x256xf32> to vector<4x256xf32>
    %74 = arith.mulf %71, %73 : vector<4x256xf32>
    %c8_43 = arith.constant 8 : index
    %c0_44 = arith.constant 0 : index
    %75 = vector.load %arg6[%c8_43, %c0_44] : memref<72x256xf32, #tpu.memory_space<vmem>>, vector<4x256xf32>
    tpu.vector_store %arg6[%c8_43, %c0_44], %74 {strides = array<i32>} : memref<72x256xf32, #tpu.memory_space<vmem>>, vector<4x256xf32>,
    %c15_i32_45 = arith.constant 15 : i32
    %76 = tpu.dynamic_rotate %65 by %c15_i32_45 dim 1 : vector<4x256xf32>, i32 -> vector<4x256xf32>
    %c2_46 = arith.constant 2 : index
    %c0_47 = arith.constant 0 : index
    %77 = vector.load %arg1[%c2_46, %c0_47] : memref<9x256xf32, #tpu.memory_space<vmem>>, vector<1x256xf32>
    %78 = vector.broadcast %77 : vector<1x256xf32> to vector<4x256xf32>
    %79 = arith.mulf %76, %78 : vector<4x256xf32>
    %c16_48 = arith.constant 16 : index
    %c0_49 = arith.constant 0 : index
    %80 = vector.load %arg6[%c16_48, %c0_49] : memref<72x256xf32, #tpu.memory_space<vmem>>, vector<4x256xf32>
    tpu.vector_store %arg6[%c16_48, %c0_49], %79 {strides = array<i32>} : memref<72x256xf32, #tpu.memory_space<vmem>>, vector<4x256xf32>,
    %c1_i32_50 = arith.constant 1 : i32
    %81 = tpu.dynamic_rotate %65 by %c1_i32_50 dim 1 : vector<4x256xf32>, i32 -> vector<4x256xf32>
    %c3_51 = arith.constant 3 : index
    %c0_52 = arith.constant 0 : index
    %82 = vector.load %arg1[%c3_51, %c0_52] : memref<9x256xf32, #tpu.memory_space<vmem>>, vector<1x256xf32>
    %83 = vector.broadcast %82 : vector<1x256xf32> to vector<4x256xf32>
    %84 = arith.mulf %81, %83 : vector<4x256xf32>
    %c24_53 = arith.constant 24 : index
    %c0_54 = arith.constant 0 : index
    %85 = vector.load %arg6[%c24_53, %c0_54] : memref<72x256xf32, #tpu.memory_space<vmem>>, vector<4x256xf32>
    tpu.vector_store %arg6[%c24_53, %c0_54], %84 {strides = array<i32>} : memref<72x256xf32, #tpu.memory_space<vmem>>, vector<4x256xf32>,
    %c32_55 = arith.constant 32 : index
    %c0_56 = arith.constant 0 : index
    %86 = vector.load %arg6[%c32_55, %c0_56] : memref<72x256xf32, #tpu.memory_space<vmem>>, vector<4x256xf32>
    tpu.vector_store %arg6[%c32_55, %c0_56], %65 {strides = array<i32>} : memref<72x256xf32, #tpu.memory_space<vmem>>, vector<4x256xf32>,
    %c255_i32_57 = arith.constant 255 : i32
    %87 = tpu.dynamic_rotate %65 by %c255_i32_57 dim 1 : vector<4x256xf32>, i32 -> vector<4x256xf32>
    %c5_58 = arith.constant 5 : index
    %c0_59 = arith.constant 0 : index
    %88 = vector.load %arg1[%c5_58, %c0_59] : memref<9x256xf32, #tpu.memory_space<vmem>>, vector<1x256xf32>
    %89 = vector.broadcast %88 : vector<1x256xf32> to vector<4x256xf32>
    %90 = arith.mulf %87, %89 : vector<4x256xf32>
    %c40_60 = arith.constant 40 : index
    %c0_61 = arith.constant 0 : index
    %91 = vector.load %arg6[%c40_60, %c0_61] : memref<72x256xf32, #tpu.memory_space<vmem>>, vector<4x256xf32>
    tpu.vector_store %arg6[%c40_60, %c0_61], %90 {strides = array<i32>} : memref<72x256xf32, #tpu.memory_space<vmem>>, vector<4x256xf32>,
    %c241_i32_62 = arith.constant 241 : i32
    %92 = tpu.dynamic_rotate %65 by %c241_i32_62 dim 1 : vector<4x256xf32>, i32 -> vector<4x256xf32>
    %c6_63 = arith.constant 6 : index
    %c0_64 = arith.constant 0 : index
    %93 = vector.load %arg1[%c6_63, %c0_64] : memref<9x256xf32, #tpu.memory_space<vmem>>, vector<1x256xf32>
    %94 = vector.broadcast %93 : vector<1x256xf32> to vector<4x256xf32>
    %95 = arith.mulf %92, %94 : vector<4x256xf32>
    %c48_65 = arith.constant 48 : index
    %c0_66 = arith.constant 0 : index
    %96 = vector.load %arg6[%c48_65, %c0_66] : memref<72x256xf32, #tpu.memory_space<vmem>>, vector<4x256xf32>
    tpu.vector_store %arg6[%c48_65, %c0_66], %95 {strides = array<i32>} : memref<72x256xf32, #tpu.memory_space<vmem>>, vector<4x256xf32>,
    %c240_i32_67 = arith.constant 240 : i32
    %97 = tpu.dynamic_rotate %65 by %c240_i32_67 dim 1 : vector<4x256xf32>, i32 -> vector<4x256xf32>
    %c7_68 = arith.constant 7 : index
    %c0_69 = arith.constant 0 : index
    %98 = vector.load %arg1[%c7_68, %c0_69] : memref<9x256xf32, #tpu.memory_space<vmem>>, vector<1x256xf32>
    %99 = vector.broadcast %98 : vector<1x256xf32> to vector<4x256xf32>
    %100 = arith.mulf %97, %99 : vector<4x256xf32>
    %c56_70 = arith.constant 56 : index
    %c0_71 = arith.constant 0 : index
    %101 = vector.load %arg6[%c56_70, %c0_71] : memref<72x256xf32, #tpu.memory_space<vmem>>, vector<4x256xf32>
    tpu.vector_store %arg6[%c56_70, %c0_71], %100 {strides = array<i32>} : memref<72x256xf32, #tpu.memory_space<vmem>>, vector<4x256xf32>,
    %c239_i32_72 = arith.constant 239 : i32
    %102 = tpu.dynamic_rotate %65 by %c239_i32_72 dim 1 : vector<4x256xf32>, i32 -> vector<4x256xf32>
    %c8_73 = arith.constant 8 : index
    %c0_74 = arith.constant 0 : index
    %103 = vector.load %arg1[%c8_73, %c0_74] : memref<9x256xf32, #tpu.memory_space<vmem>>, vector<1x256xf32>
    %104 = vector.broadcast %103 : vector<1x256xf32> to vector<4x256xf32>
    %105 = arith.mulf %102, %104 : vector<4x256xf32>
    %c64_75 = arith.constant 64 : index
    %c0_76 = arith.constant 0 : index
    %106 = vector.load %arg6[%c64_75, %c0_76] : memref<72x256xf32, #tpu.memory_space<vmem>>, vector<4x256xf32>
    tpu.vector_store %arg6[%c64_75, %c0_76], %105 {strides = array<i32>} : memref<72x256xf32, #tpu.memory_space<vmem>>, vector<4x256xf32>,
    %c0_77 = arith.constant 0 : index
    %c0_78 = arith.constant 0 : index
    %107 = vector.load %arg4[%c0_77, %c0_78] : memref<4x72xf32, #tpu.memory_space<vmem>>, vector<4x72xf32>
    %c0_79 = arith.constant 0 : index
    %c0_80 = arith.constant 0 : index
    %108 = vector.load %arg6[%c0_79, %c0_80] : memref<72x256xf32, #tpu.memory_space<vmem>>, vector<72x256xf32>
    %cst_81 = arith.constant dense<0.000000e+00> : vector<4x256xf32>
    %109 = tpu.matmul %107, %108, %cst_81 {dimension_numbers = #tpu.dot_dimension_numbers<[1], [0], [0], [1], [0, 0, 1, 1], [], []>} : vector<4x72xf32>, vector<72x256xf32>, vector<4x256xf32> -> vector<4x256xf32>
    %cst_82 = arith.constant dense<0.000000e+00> : vector<4xf32>
    %110 = vector.multi_reduction <add>, %109, %cst_82 [1] : vector<4x256xf32> to vector<4xf32>
    %111 = vector.shape_cast %110 : vector<4xf32> to vector<4x1xf32>
    %cst_83 = arith.constant 3.906250e-03 : f32
    %112 = vector.broadcast %cst_83 : f32 to vector<4x1xf32>
    %113 = arith.mulf %111, %112 : vector<4x1xf32>
    %114 = vector.broadcast %113 : vector<4x1xf32> to vector<4x256xf32>
    %115 = arith.subf %109, %114 : vector<4x256xf32>
    %116 = arith.mulf %115, %115 : vector<4x256xf32>
    %cst_84 = arith.constant dense<0.000000e+00> : vector<4xf32>
    %117 = vector.multi_reduction <add>, %116, %cst_84 [1] : vector<4x256xf32> to vector<4xf32>
    %118 = vector.shape_cast %117 : vector<4xf32> to vector<4x1xf32>
    %cst_85 = arith.constant 3.906250e-03 : f32
    %119 = vector.broadcast %cst_85 : f32 to vector<4x1xf32>
    %120 = arith.mulf %118, %119 : vector<4x1xf32>
    %cst_86 = arith.constant 9.99999974E-6 : f32
    %121 = vector.broadcast %cst_86 : f32 to vector<4x1xf32>
    %122 = arith.addf %120, %121 : vector<4x1xf32>
    %123 = math.rsqrt %122 : vector<4x1xf32>
    %124 = vector.broadcast %123 : vector<4x1xf32> to vector<4x256xf32>
    %125 = arith.mulf %115, %124 : vector<4x256xf32>
    %126 = arith.addf %125, %3 : vector<4x256xf32>
    %cst_87 = arith.constant 0.000000e+00 : f32
    %127 = vector.broadcast %cst_87 : f32 to vector<4x256xf32>
    %128 = arith.maximumf %126, %127 : vector<4x256xf32>
    %c0_88 = arith.constant 0 : index
    %c0_89 = arith.constant 0 : index
    %c0_90 = arith.constant 0 : index
    %129 = vector.load %arg5[%c0_88, %c0_89, %c0_90] : memref<1x4x256xf32, #tpu.memory_space<vmem>>, vector<1x4x256xf32>
    %130 = vector.shape_cast %129 : vector<1x4x256xf32> to vector<4x256xf32>
    %131 = vector.shape_cast %128 : vector<4x256xf32> to vector<1x4x256xf32>
    tpu.vector_store %arg5[%c0_88, %c0_89, %c0_90], %131 {strides = array<i32>} : memref<1x4x256xf32, #tpu.memory_space<vmem>>, vector<1x4x256xf32>,
    return
  }
  func.func @transform_0(%arg0: i32) -> (i32, i32) {
    %c0_i32 = arith.constant 0 : i32
    %c0_i32_0 = arith.constant 0 : i32
    %c0_i32_1 = arith.constant 0 : i32
    return %c0_i32, %c0_i32_0 : i32, i32
  }
  func.func @transform_1(%arg0: i32) -> (i32, i32, i32) {
    %c0_i32 = arith.constant 0 : i32
    %c0_i32_0 = arith.constant 0 : i32
    %c0_i32_1 = arith.constant 0 : i32
    return %arg0, %c0_i32, %c0_i32_0 : i32, i32, i32
  }
  func.func @transform_2(%arg0: i32) -> (i32, i32) {
    %c0_i32 = arith.constant 0 : i32
    %c0_i32_0 = arith.constant 0 : i32
    %c0_i32_1 = arith.constant 0 : i32
    return %c0_i32, %c0_i32_0 : i32, i32
  }
  func.func @transform_3(%arg0: i32) -> (i32, i32) {
    %c0_i32 = arith.constant 0 : i32
    %c0_i32_0 = arith.constant 0 : i32
    %c0_i32_1 = arith.constant 0 : i32
    return %c0_i32, %c0_i32_0 : i32, i32
  }
  func.func @transform_4(%arg0: i32) -> (i32, i32, i32) {
    %c0_i32 = arith.constant 0 : i32
    %c0_i32_0 = arith.constant 0 : i32
    %c0_i32_1 = arith.constant 0 : i32
    return %arg0, %c0_i32, %c0_i32_0 : i32, i32, i32
  }
}

</mosaic_0001>

<bundles_post_ra>
// kernel: tpu_custom_call.1
= control target key start
LH: loop header
LB: loop body
LE: loop exit
PB: predicated region body
PF: predicated region fallthrough
CT: control target
= control target key end

     0   :  { %9 = vsyncpa [#allocation4], 0  ;;  %s1635_s0 = inlined_call_operand.hbm [shape: f32[9,256], index: 0, kind: input, shape index: {}]   ;;  %s1636_s1 = inlined_call_operand.hbm [shape: f32[2,4,256], index: 1, kind: input, shape index: {}]   ;;  %s1637_s2 = inlined_call_operand.hbm [shape: f32[4,72], index: 2, kind: input, shape index: {}]   ;;  %s1638_s3 = inlined_call_operand.vmem [shape: f32[4,72], index: 3, kind: input, shape index: {}]   ;;  %s1639_s4 = inlined_call_operand.hbm [shape: f32[2,4,256], index: 4, kind: output, shape index: {}]  }
   0x1   :  { %10 = vsyncpa [#allocation7], 0 }
   0x2   :  { %12 = vsyncpa [#allocation7 + $0x1], 0 }
   0x3   :  { %13 = vsyncpa [#allocation5], 0 }
   0x4   :  { %15 = vsyncpa [#allocation5 + $0x1], 0  ;;  %s1280_s15 = smov 0   ;;  %s1282_s16 = smov 0  }
   0x5   :  { %s1284_s17 = smov 0   ;;  %s1286_s18 = smov 0  }
   0x6 LB: > { %s1301_s19 = sadd.s32 4294967295, %s1238_s18   ;;  %s981_s20 = sadd.s32 4294967294, %s1238_s18   ;;  %s1238_s18 = sphi %s1286_s18, %s1663_s18   ;;  %s1234_s17 = sphi %s1284_s17, %s1662_s17   ;;  %s1230_s16 = sphi %s1282_s16, %s1661_s16   ;;  %s1226_s15 = sphi %s1280_s15, %s1660_s15  }
   0x7   : > { %p62_p0 = scmp.ne.s32.totalorder %s1230_s16, %s1226_s15  ;;  %p1640_p1 = scmp.eq.s32.totalorder %s1301_s19, 0 }
   0x8   : > { %p134_p3 = scmp.eq.s32.totalorder %s981_s20, 1  ;;  %p982_p5 = scmp.ge.s32.totalorder %s1238_s18, 1 }
   0x9   : > { %p1310_p4 = por %p1640_p1, %p62_p0  ;;  %p141_p7 = scmp.lt.s32.totalorder %s1238_s18, 3 }
   0xa   : > { %p1315_p6 = por %p134_p3, %p62_p0  ;;  %s1240_s24 = smov [#allocation8]  }
   0xb   : > { %s1644_s21 = scalar_select %p1310_p4, 1, 0 }
   0xc   : > { %s1645_s22 = scalar_select %p1315_p6, 1, 0 }
   0xd   : > { %p1320_p8 = pnand %p982_p5, %p141_p7  ;;  %s167_s25 = sshll.u32 %s1240_s24, 4  ;;  %s168_s25 = int_to_ptr.vmem [resolvable:$true] %s167_s25 }
   0xe   : > { %s1241_s26 = smov [#allocation3]   ;;  %s1097_s29 = scalar_lea.vmem %s168_s25, 64 }
   0xf   : > { %s1646_s23 = scalar_select %p1320_p8, 1, 0 }
  0x10   : > { %p1015_p10 = pneg %p1320_p8  ;;  %s153_s27 = sshll.u32 %s1241_s26, 4  ;;  %s154_s27 = int_to_ptr.vmem [resolvable:$true] %s153_s27 }
  0x11   : > { %p1098_p13 = scmp.ne.s32.totalorder %s168_s25, %s1097_s29  ;;  %p1105_p5 = scmp.lt.s32.totalorder %s168_s25, %s168_s25 }
  0x12   : > { %p1329_p11 = pnand %p1015_p10, %p1640_p1  ;;  %p1106_p7 = scmp.lt.s32.totalorder %s1097_s29, %s1097_s29 }
  0x14   : > { %p1088_p12 = pneg %p1329_p11  ;;  %p1107_p9 = por %p1106_p7, %p1105_p5 }
  0x16   : > { %p1100_p0 = pnand %p1098_p13, %p1088_p12 }
  0x18   : > { %p1101_p3 = pneg %p1100_p0 }
  0x1a   : > { %p1108_p2 = pnand %p1107_p9, %p1101_p3 }
  0x1c   : > { %1111 = shalt.err (!%p1108_p2)
}
  0x1d   : > { %1021 = dma.hbm_to_vmem [thread:$0]  (!%p1329_p11), %s1637_s2, 64, %s168_s25, [#allocation7]  }
  0x1e   : > { %s1123_s6 = scalar_lea.vmem %s154_s27, 512  ;;  %p1131_p13 = scmp.lt.s32.totalorder %s154_s27, %s154_s27 }
  0x1f   : > { %p1124_p10 = scmp.ne.s32.totalorder %s154_s27, %s1123_s6  ;;  %p1132_p0 = scmp.lt.s32.totalorder %s1123_s6, %s1123_s6 }
  0x21   : > { %p1126_p1 = pnand %p1124_p10, %p1088_p12  ;;  %p1133_p4 = por %p1132_p0, %p1131_p13 }
  0x23   : > { %p1127_p6 = pneg %p1126_p1 }
  0x25   : > { %p1134_p8 = pnand %p1133_p4, %p1127_p6 }
  0x27   : > { %1137 = shalt.err (!%p1134_p8)
}
  0x28   : > { %s1242_s7 = smov 256   ;;  %s1243_s8 = smov 16  }
  0x29   : > { %1018 = dma.hbm_to_vmem [thread:$0]  (!%p1329_p11), %s1635_s0, 512, %s154_s27, [#allocation4], %s1242_s7, %s1242_s7, %s1243_s8  }
  0x2a   : > { %s1352_s11 = sadd.s32 1, %s1238_s18   ;;  %s49_s12 = sadd.s32 1, %s1234_s17 }
  0x2b   : > { %s46_s13 = ssub.s32 %s1238_s18, %s1352_s11  ;;  %p56_p1 = scmp.ne.s32.totalorder %s1234_s17, %s1230_s16 }
  0x2c   : > { %p47_p2 = scmp.eq.s32.totalorder %s46_s13, 0  ;;  %p57_p4 = scmp.eq.s32.totalorder %s1238_s18, 0 }
  0x2d   : > { %p1648_p6 = scmp.eq.s32.totalorder %s1301_s19, 1  ;;  %p1032_p9 = scmp.lt.s32.totalorder %s1238_s18, 2 }
  0x2e   : > { %s1368_s20 = scalar_select %p47_p2, %s1234_s17, %s49_s12  }
  0x2f   : > { %p1362_p8 = por %p1648_p6, %p56_p1  ;;  %p58_p12 = por %p57_p4, %p56_p1 }
  0x30   : > { %s181_s24 = sand.u32 1, %s1238_s18   ;;  %s183_s25 = sand.u32 1, %s1234_s17  }
  0x31   : > { %s1649_s14 = scalar_select %p1362_p8, 1, 0 }
  0x32   : > { %s986_s26 = sshll.u32 %s183_s25, 3  ;;  %s1001_s27 = sshll.u32 %s1238_s18, 7 }
  0x33   : > { %s1376_s30 = scalar_lea.hbm %s1636_s1, %s1001_s27  ;;  %s185_s5 = scalar_lea.vmem [#allocation6], %s986_s26 }
  0x34   : > { %s193_s6 = sshll.u32 %s185_s5, 4  ;;  %p1378_p11 = pnand %p1032_p9, %p58_p12  ;;  %s194_s6 = int_to_ptr.vmem [resolvable:$true] %s193_s6 }
  0x35   : > { %s182_s8 = scalar_lea.sflag [#allocation7], %s181_s24  ;;  %s1138_s9 = scalar_lea.hbm %s1376_s30, 128 }
  0x36   : > { %p1139_p3 = scmp.ne.s32.totalorder %s1376_s30, %s1138_s9  ;;  %p1140_p5 = pneg %p1378_p11 }
  0x37   : > { %s1143_s13 = scalar_lea.hbm %s1636_s1, 256  ;;  %p1144_p13 = scmp.lt.s32.totalorder %s1376_s30, %s1636_s1 }
  0x38   : > { %p1141_p7 = pnand %p1140_p5, %p1139_p3  ;;  %p1145_p0 = scmp.lt.s32.totalorder %s1143_s13, %s1138_s9 }
  0x3a   : > { %p1142_p10 = pneg %p1141_p7  ;;  %p1146_p1 = por %p1145_p0, %p1144_p13 }
  0x3c   : > { %p1147_p2 = pnand %p1146_p1, %p1142_p10 }
  0x3e   : > { %1150 = shalt.err (!%p1147_p2)
}
  0x3f   : > { %s1151_s27 = scalar_lea.vmem %s194_s6, 128  ;;  %s1244_s24 = smov [#allocation6]  }
  0x40   : > { %p1152_p4 = scmp.ne.s32.totalorder %s194_s6, %s1151_s27  ;;  %s1156_s28 = sshll.u32 %s1244_s24, 4  ;;  %s1157_s28 = int_to_ptr.vmem [resolvable:$false] %s1156_s28 }
  0x41   : > { %s1158_s29 = scalar_lea.vmem %s1157_s28, 256  ;;  %p1159_p12 = scmp.lt.s32.totalorder %s194_s6, %s1157_s28 }
  0x42   : > { %p1154_p6 = pnand %p1152_p4, %p1140_p5  ;;  %p1160_p3 = scmp.lt.s32.totalorder %s1158_s29, %s1151_s27 }
  0x44   : > { %p1155_p9 = pneg %p1154_p6  ;;  %p1161_p7 = por %p1160_p3, %p1159_p12 }
  0x46   : > { %p1162_p8 = pnand %p1161_p7, %p1155_p9 }
  0x48   : > { %1165 = shalt.err (!%p1162_p8)
}
  0x49   : > { %1025 = dma.hbm_to_vmem [thread:$0]  (!%p1378_p11), %s1376_s30, 128, %s194_s6, %s182_s8  }
  0x4a   : > { %p1651_p10 = scmp.ne.s32.totalorder %s1646_s23, 0 }
  0x4b   : > { %p1652_p13 = scmp.eq.s32.totalorder (!%p1651_p10), %s1301_s19, 0 }
  0x4c   : > { %202 = sbr.rel (%p1651_p10) target bundleno = 1431 (0x597), region = 36 }
  0x51   : > { %1209 = dma.done.wait (%p1652_p13), [#allocation4], 512   ;;  %p1653_p5 = pmov %p1652_p13 }
  0x52   : > { %s208_s5 = sand.u32 1, %s1301_s19   ;;  %s210_s9 = sand.u32 1, %s1230_s16  }
  0x53   : > { %1211 = vsyncadd (%p1653_p5), [#allocation4], 4294966784  ;;  %s1406_s10 = sshll.u32 %s210_s9, 3  ;;  %s209_s30 = scalar_lea.sflag [#allocation7], %s208_s5 }
  0x54   : > { %s212_s6 = scalar_lea.vmem [#allocation6], %s1406_s10  ;;  %p1654_p8 = scmp.ne.s32.totalorder %s1644_s21, 0 }
  0x56   : > { %1213 = dma.done.wait (%p1654_p8), %s209_s30, 128  }
  0x57   : > { %1215 = vsyncadd (%p1654_p8), %s209_s30, 4294967168  ;;  %p1655_p11 = pmov %p1653_p5 }
  0x58   : > { %p1656_p0 = pmov %p1653_p5 }
  0x59   : > { %1217 = dma.done.wait (%p1655_p11), [#allocation7], 64  }
  0x5a   : > { %1219 = vsyncadd (%p1656_p0), [#allocation7], 4294967232  ;;  %v1245_v0 = vmov 0.0   ;;  %v1417_v1 = vld [vmem:[%s212_s6] sm:$0xff]  ;;  %s1246_s21 = smov 112   ;;  %s1247_s23 = smov 111   ;;  %v267_v3 = vlaneseq }
  0x5b   : > { %255 = vst [vmem:[#allocation2 + $0x30] sm:$0xff] %v1245_v0  ;;  %256 = vst [vmem:[#allocation2 + $0x18] sm:$0xff] %v1245_v0  ;;  %545 = vmatprep.mubr.f32.mxu0 %v1245_v0  ;;  %839 = vmatprep.mubr.f32.mxu1 %v1245_v0  ;;  %v1425_v2 = vcombine.high %v1417_v1, %v1417_v1  ;;  %s1248_s7 = smov 113   ;;  %s1249_s8 = smov 127   ;;  %vm477_vm8 = vcmask 588800   ;;  %vm552_vm9 = vcmask 1043456  }
  0x5c   : > { %241 = vst [vmem:[#allocation2] sm:$0xff] %v1245_v0  ;;  %242 = vst [vmem:[#allocation2 + $0x38] sm:$0xff] %v1245_v0  ;;  %410 = vrot.lane.b32.xlu1 %v1417_v1, %s1246_s21  ;;  %434 = vrot.lane.b32.xlu0 %v1417_v1, %s1247_s23  ;;  %s1250_s12 = smov 1   ;;  %s1251_s13 = smov 15   ;;  %v275_v4 = vshrl.u32 %v267_v3, 7  ;;  %v1457_v5 = vand.u32 127, %v267_v3 }
  0x5d   : > { %243 = vst [vmem:[#allocation2 + $0x78] sm:$0xff] %v1245_v0  ;;  %244 = vst [vmem:[#allocation2 + $0x58] sm:$0xff] %v1245_v0  ;;  %s1252_s25 = smov 16   ;;  %s1253_s26 = smov 17  }
  0x5e   : > { %245 = vst [vmem:[#allocation2 + $0x20] sm:$0xff] %v1245_v0  ;;  %246 = vst [vmem:[#allocation2 + $0x8] sm:$0xff] %v1245_v0  ;;  %v1459_v6 = vsub.s32 0, %v275_v4  ;;  %v1461_v7 = vsub.s32 1, %v275_v4  ;;  %vm414_vm0 = vcmp.lt.s32.totalorder %v1457_v5, 112  ;;  %vm390_vm1 = vcmp.lt.s32.totalorder %v1457_v5, 113 }
  0x5f   : > { %247 = vst [vmem:[#allocation2 + $0x70] sm:$0xff] %v1245_v0  ;;  %248 = vst [vmem:[#allocation2 + $0x80] sm:$0xff] %v1245_v0  ;;  %v418_v8 = vld [vmem:[#allocation3 + $0x7] ss:$8 sm:$0x3]  ;;  %vm438_vm2 = vcmp.lt.s32.totalorder %v1457_v5, 111 }
  0x60   : > { %249 = vst [vmem:[#allocation2 + $0x88] sm:$0xff] %v1245_v0  ;;  %250 = vst [vmem:[#allocation2 + $0x40] sm:$0xff] %v1245_v0  ;;  %386 = vrot.lane.b32.xlu0 %v1417_v1, %s1248_s7  ;;  %412 = vrot.lane.b32.xlu1 %v1425_v2, %s1246_s21  ;;  %v423_v11 = vrot.slane %v418_v8, %v1459_v6  ;;  %v427_v12 = vrot.slane %v418_v8, %v1461_v7  ;;  %v394_v13 = vld [vmem:[#allocation3 + $0x6] ss:$8 sm:$0x3]  ;;  %vm366_vm3 = vcmp.lt.s32.totalorder %v1457_v5, 127 }
  0x61   : > { %251 = vst [vmem:[#allocation2 + $0x50] sm:$0xff] %v1245_v0  ;;  %252 = vst [vmem:[#allocation2 + $0x28] sm:$0xff] %v1245_v0  ;;  %v442_v14 = vld [vmem:[#allocation3 + $0x10] ss:$8 sm:$0x3]  ;;  %v399_v19 = vrot.slane %v394_v13, %v1459_v6  ;;  %v403_v20 = vrot.slane %v394_v13, %v1461_v7  ;;  %vm340_vm4 = vcmp.lt.s32.totalorder %v1457_v5, 1 }
  0x62   : > { %253 = vst [vmem:[#allocation2 + $0x10] sm:$0xff] %v1245_v0  ;;  %254 = vst [vmem:[#allocation2 + $0x48] sm:$0xff] %v1245_v0  ;;  %v370_v21 = vld [vmem:[#allocation3 + $0x5] ss:$8 sm:$0x3]  ;;  %v447_v24 = vrot.slane %v442_v14, %v1459_v6  ;;  %v451_v25 = vrot.slane %v442_v14, %v1461_v7  ;;  %vm316_vm5 = vcmp.lt.s32.totalorder %v1457_v5, 15 }
  0x63   : > { %257 = vst [vmem:[#allocation2 + $0x68] sm:$0xff] %v1245_v0  ;;  %258 = vst [vmem:[#allocation2 + $0x60] sm:$0xff] %v1245_v0  ;;  %v375_v28 = vrot.slane %v370_v21, %v1459_v6  ;;  %v379_v29 = vrot.slane %v370_v21, %v1461_v7  ;;  %v344_v38 = vld [vmem:[#allocation3 + $0x3] ss:$8 sm:$0x3]  ;;  %vm292_vm6 = vcmp.lt.s32.totalorder %v1457_v5, 16 }
  0x64   : > { %360 = vst [vmem:[#allocation2 + $0x88] sm:$0xf] %v1417_v1  ;;  %361 = vst [vmem:[#allocation2 + $0x40] sm:$0xf] %v1425_v2  ;;  %388 = vrot.lane.b32.xlu1 %v1425_v2, %s1248_s7  ;;  %436 = vrot.lane.b32.xlu0 %v1425_v2, %s1247_s23  ;;  %v349_v45 = vrot.slane %v344_v38, %v1459_v6  ;;  %v353_v46 = vrot.slane %v344_v38, %v1461_v7  ;;  %vm269_vm7 = vcmp.lt.s32.totalorder %v1457_v5, 17  ;;  %s1002_s28 = sshll.u32 %s1301_s19, 7 }
  0x65   : > { %v320_v47 = vld [vmem:[#allocation3 + $0x2] ss:$8 sm:$0x3]  ;;  %v296_v58 = vld [vmem:[#allocation3 + $0x1] ss:$8 sm:$0x3] }
  0x66   : > { %v325_v54 = vrot.slane %v320_v47, %v1459_v6  ;;  %v329_v55 = vrot.slane %v320_v47, %v1461_v7  ;;  %v301_v8 = vrot.slane %v296_v58, %v1459_v6  ;;  %v753_v5 = vld [vmem:[%s1638_s3] sm:$0xf]  ;;  %s240_s29 = scalar_lea.vmem [#allocation9], %s1406_s10  ;;  %p1657_p2 = scmp.ne.s32.totalorder %s1649_s14, 0 }
  0x67   : > { %s890_s5 = sshll.u32 %s240_s29, 4  ;;  %s891_s5 = int_to_ptr.vmem [resolvable:$true] %s890_s5 }
  0x68   : > { %364 = vrot.lane.b32.xlu1 %v1425_v2, %s1249_s8  ;;  %362 = vrot.lane.b32.xlu0 %v1417_v1, %s1249_s8 }
  0x6c   : > { %338 = vrot.lane.b32.xlu1 %v1425_v2, %s1250_s12  ;;  %336 = vrot.lane.b32.xlu0 %v1417_v1, %s1250_s12 }
  0x70   : > { %314 = vrot.lane.b32.xlu1 %v1425_v2, %s1251_s13  ;;  %312 = vrot.lane.b32.xlu0 %v1417_v1, %s1251_s13 }
  0x74   : > { %290 = vrot.lane.b32.xlu1 %v1425_v2, %s1252_s25  ;;  %288 = vrot.lane.b32.xlu0 %v1417_v1, %s1252_s25 }
  0x78   : > { %265 = vrot.lane.b32.xlu1 %v1425_v2, %s1253_s26  ;;  %263 = vrot.lane.b32.xlu0 %v1417_v1, %s1253_s26 }
  0xce   : > { %v411_v9 = vpop.permute.xlu1 %410  ;;  %v435_v10 = vpop.permute.xlu0 %434 }
  0xd2   : > { %v387_v15 = vpop.permute.xlu0 %386  ;;  %v413_v16 = vpop.permute.xlu1 %412 }
  0xd3   : > { %v415_v17 = vsel %vm414_vm0, %v411_v9, %v413_v16  ;;  %v416_v18 = vsel %vm414_vm0, %v413_v16, %v411_v9  ;;  %v305_v9 = vrot.slane %v296_v58, %v1461_v7 }
  0xd4   : > { %v430_v22 = vmul.f32 %v423_v11, %v415_v17  ;;  %v431_v23 = vmul.f32 %v427_v12, %v416_v18  ;;  %v272_v11 = vld [vmem:[#allocation3] ss:$8 sm:$0x3]  ;;  %v468_v18 = vld [vmem:[#allocation2 + $0x40] sm:$0xff] }
  0xd6   : > { %432 = vst [vmem:[#allocation2 + $0x30] sm:$0xf] %v430_v22  ;;  %433 = vst [vmem:[#allocation2 + $0x18] sm:$0xf] %v431_v23  ;;  %v389_v26 = vpop.permute.xlu1 %388  ;;  %v437_v27 = vpop.permute.xlu0 %436  ;;  %v277_v22 = vrot.slane %v272_v11, %v1459_v6  ;;  %v281_v23 = vrot.slane %v272_v11, %v1461_v7 }
  0xd7   : > { %v391_v30 = vsel %vm390_vm1, %v387_v15, %v389_v26  ;;  %v392_v31 = vsel %vm390_vm1, %v389_v26, %v387_v15  ;;  %v439_v32 = vsel %vm438_vm2, %v435_v10, %v437_v27  ;;  %v440_v33 = vsel %vm438_vm2, %v437_v27, %v435_v10 }
  0xd8   : > { %v406_v34 = vmul.f32 %v399_v19, %v391_v30  ;;  %v407_v35 = vmul.f32 %v403_v20, %v392_v31  ;;  %v454_v36 = vmul.f32 %v447_v24, %v439_v32  ;;  %v455_v37 = vmul.f32 %v451_v25, %v440_v33  ;;  %v467_v24 = vld [vmem:[#allocation2 + $0x88] sm:$0xff] }
  0xda   : > { %408 = vst [vmem:[#allocation2 + $0x10] sm:$0xf] %v406_v34  ;;  %409 = vst [vmem:[#allocation2 + $0x48] sm:$0xf] %v407_v35  ;;  %v365_v39 = vpop.permute.xlu1 %364  ;;  %v363_v40 = vpop.permute.xlu0 %362 }
  0xdb   : > { %456 = vst [vmem:[#allocation2 + $0x68] sm:$0xf] %v454_v36  ;;  %457 = vst [vmem:[#allocation2 + $0x60] sm:$0xf] %v455_v37  ;;  %v367_v41 = vsel %vm366_vm3, %v363_v40, %v365_v39  ;;  %v368_v42 = vsel %vm366_vm3, %v365_v39, %v363_v40  ;;  %v458_v39 = vld [vmem:[#allocation8] sm:$0xf] }
  0xdc   : > { %v382_v43 = vmul.f32 %v375_v28, %v367_v41  ;;  %v383_v44 = vmul.f32 %v379_v29, %v368_v42 }
  0xdd   : > { %v474_v63 = vld [vmem:[#allocation2 + $0x18] sm:$0xff]  ;;  %v473_v4 = vld [vmem:[#allocation2 + $0x30] sm:$0xff] }
  0xde   : > { %384 = vst [vmem:[#allocation2 + $0x50] sm:$0xf] %v382_v43  ;;  %385 = vst [vmem:[#allocation2 + $0x28] sm:$0xf] %v383_v44  ;;  %v339_v48 = vpop.permute.xlu1 %338  ;;  %v337_v49 = vpop.permute.xlu0 %336 }
  0xdf   : > { %v341_v50 = vsel %vm340_vm4, %v337_v49, %v339_v48  ;;  %v342_v51 = vsel %vm340_vm4, %v339_v48, %v337_v49 }
  0xe0   : > { %v356_v52 = vmul.f32 %v349_v45, %v342_v51  ;;  %v357_v53 = vmul.f32 %v353_v46, %v341_v50 }
  0xe1   : > { %v472_v10 = vld [vmem:[#allocation2 + $0x48] sm:$0xff]  ;;  %v471_v14 = vld [vmem:[#allocation2 + $0x10] sm:$0xff] }
  0xe2   : > { %v476_v56 = vld [vmem:[#allocation2 + $0x60] sm:$0xff]  ;;  %v475_v57 = vld [vmem:[#allocation2 + $0x68] sm:$0xff]  ;;  %358 = vst [vmem:[#allocation2 + $0x70] sm:$0xf] %v356_v52  ;;  %359 = vst [vmem:[#allocation2 + $0x80] sm:$0xf] %v357_v53  ;;  %v315_v59 = vpop.permute.xlu1 %314  ;;  %v313_v60 = vpop.permute.xlu0 %312 }
  0xe3   : > { %495 = vmatprep.subr.mxu0 %v476_v56  ;;  %v317_v61 = vsel %vm316_vm5, %v313_v60, %v315_v59  ;;  %v318_v62 = vsel %vm316_vm5, %v315_v59, %v313_v60 }
  0xe4   : > { %496 = vmatpush1.msra.mxu0 %v475_v57  ;;  %v332_v0 = vmul.f32 %v325_v54, %v318_v62  ;;  %v333_v3 = vmul.f32 %v329_v55, %v317_v61  ;;  %v737_v62 = vld [vmem:[#allocation3 + $0x10] ss:$8 sm:$0x3] }
  0xe5   : > { %497 = vmatprep.subr.mxu0 %v474_v63  ;;  %v470_v17 = vld [vmem:[#allocation2 + $0x28] sm:$0xff]  ;;  %v469_v21 = vld [vmem:[#allocation2 + $0x50] sm:$0xff]  ;;  %v742_v63 = vrot.slane %v737_v62, %v1459_v6 }
  0xe6   : > { %498 = vmatpush1.msra.mxu0 %v473_v4  ;;  %334 = vst [vmem:[#allocation2 + $0x20] sm:$0xf] %v332_v0  ;;  %335 = vst [vmem:[#allocation2 + $0x8] sm:$0xf] %v333_v3  ;;  %v291_v12 = vpop.permute.xlu1 %290  ;;  %v289_v13 = vpop.permute.xlu0 %288  ;;  %v746_v0 = vrot.slane %v737_v62, %v1461_v7 }
  0xe7   : > { %499 = vmatprep.subr.mxu0 %v472_v10  ;;  %v293_v15 = vsel %vm292_vm6, %v289_v13, %v291_v12  ;;  %v294_v16 = vsel %vm292_vm6, %v291_v12, %v289_v13  ;;  %v715_v3 = vld [vmem:[#allocation3 + $0x7] ss:$8 sm:$0x3] }
  0xe8   : > { %500 = vmatpush1.msra.mxu0 %v471_v14  ;;  %v308_v19 = vmul.f32 %v301_v8, %v294_v16  ;;  %v309_v20 = vmul.f32 %v305_v9, %v293_v15  ;;  %v720_v13 = vrot.slane %v715_v3, %v1459_v6  ;;  %v724_v14 = vrot.slane %v715_v3, %v1461_v7  ;;  %v693_v15 = vld [vmem:[#allocation3 + $0x6] ss:$8 sm:$0x3] }
  0xe9   : > { %501 = vmatprep.subr.mxu0 %v470_v17  ;;  %v466_v29 = vld [vmem:[#allocation2 + $0x80] sm:$0xff]  ;;  %v465_v32 = vld [vmem:[#allocation2 + $0x70] sm:$0xff] }
  0xea   : > { %502 = vmatpush1.msra.mxu0 %v469_v21  ;;  %310 = vst [vmem:[#allocation2 + $0x78] sm:$0xf] %v308_v19  ;;  %311 = vst [vmem:[#allocation2 + $0x58] sm:$0xf] %v309_v20  ;;  %v266_v25 = vpop.permute.xlu1 %265  ;;  %v264_v26 = vpop.permute.xlu0 %263 }
  0xeb   : > { %503 = vmatprep.subr.mxu0 %v468_v18  ;;  %v270_v27 = vsel %vm269_vm7, %v264_v26, %v266_v25  ;;  %v271_v28 = vsel %vm269_vm7, %v266_v25, %v264_v26 }
  0xec   : > { %504 = vmatpush1.msra.mxu0 %v467_v24  ;;  %v284_v30 = vmul.f32 %v277_v22, %v271_v28  ;;  %v285_v31 = vmul.f32 %v281_v23, %v270_v27  ;;  %v698_v22 = vrot.slane %v693_v15, %v1459_v6  ;;  %v702_v23 = vrot.slane %v693_v15, %v1461_v7  ;;  %v671_v24 = vld [vmem:[#allocation3 + $0x5] ss:$8 sm:$0x3] }
  0xed   : > { %505 = vmatprep.subr.mxu0 %v466_v29  ;;  %v464_v33 = vld [vmem:[#allocation2 + $0x8] sm:$0xff]  ;;  %v463_v34 = vld [vmem:[#allocation2 + $0x20] sm:$0xff] }
  0xee   : > { %506 = vmatpush1.msra.mxu0 %v465_v32  ;;  %286 = vst [vmem:[#allocation2] sm:$0xf] %v284_v30  ;;  %287 = vst [vmem:[#allocation2 + $0x38] sm:$0xf] %v285_v31  ;;  %v676_v31 = vrot.slane %v671_v24, %v1459_v6  ;;  %v680_v32 = vrot.slane %v671_v24, %v1461_v7 }
  0xef   : > { %507 = vmatprep.subr.mxu0 %v464_v33 }
  0xf0   : > { %508 = vmatpush1.msra.mxu0 %v463_v34 }
  0xf1   : > { %v462_v35 = vld [vmem:[#allocation2 + $0x58] sm:$0xff] }
  0xf2   : > { %v461_v36 = vld [vmem:[#allocation2 + $0x78] sm:$0xff]  ;;  %509 = vmatprep.subr.mxu0 %v462_v35 }
  0xf3   : > { %510 = vmatpush1.msra.mxu0 %v461_v36  ;;  %v647_v35 = vld [vmem:[#allocation3 + $0x3] ss:$8 sm:$0x3] }
  0xf5   : > { %v460_v37 = vld [vmem:[#allocation2 + $0x38] sm:$0xff]  ;;  %v459_v38 = vld [vmem:[#allocation2] sm:$0xff] }
  0xf6   : > { %511 = vmatprep.subr.mxu0 %v460_v37 }
  0xf7   : > { %512 = vmatpush1.msra.mxu0 %v459_v38 }
  0xf8   : > { %994 = vmatmul.mubr.msk.f32.vlgmr.msra.gmra.mxu0 %vm477_vm8, %v458_v39 }
 0x1b8   : > { %v547_v40 = vpop.f32.mrf.mxu0 }
 0x1b9   : > { %v553_v42 = vsel %vm552_vm9, %v547_v40, 0.0 }
 0x1ba   : > { %v549_v41 = vpop.f32.mrf.mxu0 }
 0x1bb   : > { %v554_v43 = vsel %vm552_vm9, %v549_v41, 0.0 }
 0x1bc   : > { %v555_v44 = vadd.f32 %v554_v43, %v553_v42  ;;  %v652_v42 = vrot.slane %v647_v35, %v1459_v6  ;;  %v656_v43 = vrot.slane %v647_v35, %v1461_v7 }
 0x1be   : > { %556 = vadd.xlane.f32.xlu0 %v555_v44 }
 0x247   : > { %v557_v45 = vpop.xlane.xlu0 %556 }
 0x248   : > { %v558_v46 = vmul.f32 0.00390625, %v557_v45 }
 0x24a   : > { %v559_v47 = vsub.f32 %v547_v40, %v558_v46  ;;  %v560_v48 = vsub.f32 %v549_v41, %v558_v46  ;;  %v625_v46 = vld [vmem:[#allocation3 + $0x2] ss:$8 sm:$0x3] }
 0x24c   : > { %v561_v49 = vmul.f32 %v559_v47, %v559_v47  ;;  %v562_v50 = vmul.f32 %v560_v48, %v560_v48 }
 0x24e   : > { %v563_v51 = vsel %vm552_vm9, %v561_v49, 0.0  ;;  %v564_v52 = vsel %vm552_vm9, %v562_v50, 0.0 }
 0x24f   : > { %v565_v53 = vadd.f32 %v564_v52, %v563_v51 }
 0x251   : > { %566 = vadd.xlane.f32.xlu1 %v565_v53  ;;  %v630_v53 = vrot.slane %v625_v46, %v1459_v6 }
 0x2da   : > { %v567_v54 = vpop.xlane.xlu1 %566 }
 0x2db   : > { %v568_v55 = vmul.f32 0.00390625, %v567_v54  ;;  %v634_v54 = vrot.slane %v625_v46, %v1461_v7 }
 0x2dd   : > { %v569_v56 = vadd.f32 1e-05, %v568_v55 }
 0x2df   : > { %1082 = vrsqrt.f32 %v569_v56 }
 0x2ec   : > { %v1083_v57 = vpop.eup %1082 }
 0x2ed   : > { %v571_v58 = vmul.f32 %v1083_v57, %v559_v47  ;;  %v572_v59 = vmul.f32 %v1083_v57, %v560_v48  ;;  %v603_v57 = vld [vmem:[#allocation3 + $0x1] ss:$8 sm:$0x3] }
 0x2ee   : > { %v612_v3 = vrot.slane %v603_v57, %v1461_v7 }
 0x2ef   : > { %v573_v60 = vmax.f32 %v571_v58, 0.0  ;;  %v574_v61 = vmax.f32 %v572_v59, 0.0 }
 0x2f1   : > { %663 = vst [vmem:[#allocation2 + $0x88] sm:$0xf] %v573_v60  ;;  %664 = vst [vmem:[#allocation2 + $0x40] sm:$0xf] %v574_v61  ;;  %733 = vrot.lane.b32.xlu1 %v574_v61, %s1247_s23  ;;  %731 = vrot.lane.b32.xlu0 %v573_v60, %s1247_s23  ;;  %s876_s23 = scalar_lea.sflag [#allocation5], %s210_s9 }
 0x2f5   : > { %711 = vrot.lane.b32.xlu1 %v574_v61, %s1246_s21  ;;  %709 = vrot.lane.b32.xlu0 %v573_v60, %s1246_s21  ;;  %s888_s21 = scalar_lea.hbm %s1639_s4, %s1002_s28 }
 0x2f9   : > { %689 = vrot.lane.b32.xlu1 %v574_v61, %s1248_s7  ;;  %687 = vrot.lane.b32.xlu0 %v573_v60, %s1248_s7  ;;  %s1166_s7 = scalar_lea.vmem %s891_s5, 128 }
 0x2fa   : > { %p1167_p1 = scmp.ne.s32.totalorder %s891_s5, %s1166_s7 }
 0x2fc   : > { %p1168_p4 = pnand %p1167_p1, %p1657_p2 }
 0x2fd   : > { %667 = vrot.lane.b32.xlu1 %v574_v61, %s1249_s8  ;;  %665 = vrot.lane.b32.xlu0 %v573_v60, %s1249_s8  ;;  %s1254_s8 = smov [#allocation9]  }
 0x2fe   : > { %p1169_p6 = pneg %p1168_p4  ;;  %s1170_s19 = sshll.u32 %s1254_s8, 4  ;;  %s1171_s19 = int_to_ptr.vmem [resolvable:$false] %s1170_s19 }
 0x2ff   : > { %s1172_s10 = scalar_lea.vmem %s1171_s19, 256  ;;  %p1173_p9 = scmp.lt.s32.totalorder %s891_s5, %s1171_s19 }
 0x300   : > { %p1174_p12 = scmp.lt.s32.totalorder %s1172_s10, %s1166_s7 }
 0x301   : > { %643 = vrot.lane.b32.xlu1 %v574_v61, %s1250_s12  ;;  %641 = vrot.lane.b32.xlu0 %v573_v60, %s1250_s12 }
 0x302   : > { %p1175_p3 = por %p1174_p12, %p1173_p9 }
 0x304   : > { %p1176_p7 = pnand %p1175_p3, %p1169_p6 }
 0x305   : > { %621 = vrot.lane.b32.xlu1 %v574_v61, %s1251_s13  ;;  %619 = vrot.lane.b32.xlu0 %v573_v60, %s1251_s13 }
 0x309   : > { %599 = vrot.lane.b32.xlu1 %v574_v61, %s1252_s25  ;;  %597 = vrot.lane.b32.xlu0 %v573_v60, %s1252_s25 }
 0x30d   : > { %577 = vrot.lane.b32.xlu1 %v574_v61, %s1253_s26  ;;  %575 = vrot.lane.b32.xlu0 %v573_v60, %s1253_s26 }
 0x363   : > { %v734_v4 = vpop.permute.xlu1 %733  ;;  %v732_v8 = vpop.permute.xlu0 %731 }
 0x364   : > { %v735_v9 = vsel %vm438_vm2, %v732_v8, %v734_v4  ;;  %v736_v10 = vsel %vm438_vm2, %v734_v4, %v732_v8 }
 0x365   : > { %v749_v11 = vmul.f32 %v742_v63, %v735_v9  ;;  %v750_v12 = vmul.f32 %v746_v0, %v736_v10  ;;  %v608_v0 = vrot.slane %v603_v57, %v1459_v6  ;;  %v581_v9 = vld [vmem:[#allocation3] ss:$8 sm:$0x3] }
 0x367   : > { %751 = vst [vmem:[#allocation2 + $0x68] sm:$0xf] %v749_v11  ;;  %752 = vst [vmem:[#allocation2 + $0x60] sm:$0xf] %v750_v12  ;;  %v712_v16 = vpop.permute.xlu1 %711  ;;  %v710_v17 = vpop.permute.xlu0 %709 }
 0x368   : > { %v713_v18 = vsel %vm414_vm0, %v710_v17, %v712_v16  ;;  %v714_v19 = vsel %vm414_vm0, %v712_v16, %v710_v17  ;;  %v762_v17 = vld [vmem:[#allocation2 + $0x88] sm:$0xff] }
 0x369   : > { %v727_v20 = vmul.f32 %v720_v13, %v713_v18  ;;  %v728_v21 = vmul.f32 %v724_v14, %v714_v19  ;;  %v763_v14 = vld [vmem:[#allocation2 + $0x40] sm:$0xff]  ;;  %v586_v18 = vrot.slane %v581_v9, %v1459_v6  ;;  %v590_v19 = vrot.slane %v581_v9, %v1461_v7 }
 0x36b   : > { %729 = vst [vmem:[#allocation2 + $0x30] sm:$0xf] %v727_v20  ;;  %730 = vst [vmem:[#allocation2 + $0x18] sm:$0xf] %v728_v21  ;;  %v690_v25 = vpop.permute.xlu1 %689  ;;  %v688_v26 = vpop.permute.xlu0 %687 }
 0x36c   : > { %v691_v27 = vsel %vm390_vm1, %v688_v26, %v690_v25  ;;  %v692_v28 = vsel %vm390_vm1, %v690_v25, %v688_v26 }
 0x36d   : > { %v705_v29 = vmul.f32 %v698_v22, %v691_v27  ;;  %v706_v30 = vmul.f32 %v702_v23, %v692_v28 }
 0x36e   : > { %v771_v33 = vld [vmem:[#allocation2 + $0x60] sm:$0xff]  ;;  %v770_v34 = vld [vmem:[#allocation2 + $0x68] sm:$0xff] }
 0x36f   : > { %707 = vst [vmem:[#allocation2 + $0x10] sm:$0xf] %v705_v29  ;;  %708 = vst [vmem:[#allocation2 + $0x48] sm:$0xf] %v706_v30  ;;  %v668_v36 = vpop.permute.xlu1 %667  ;;  %789 = vmatprep.subr.mxu1 %v771_v33  ;;  %v666_v37 = vpop.permute.xlu0 %665 }
 0x370   : > { %v669_v38 = vsel %vm366_vm3, %v666_v37, %v668_v36  ;;  %v670_v39 = vsel %vm366_vm3, %v668_v36, %v666_v37  ;;  %790 = vmatpush1.msra.mxu1 %v770_v34 }
 0x371   : > { %v683_v40 = vmul.f32 %v676_v31, %v669_v38  ;;  %v684_v41 = vmul.f32 %v680_v32, %v670_v39 }
 0x372   : > { %v769_v44 = vld [vmem:[#allocation2 + $0x18] sm:$0xff]  ;;  %v768_v45 = vld [vmem:[#allocation2 + $0x30] sm:$0xff] }
 0x373   : > { %685 = vst [vmem:[#allocation2 + $0x50] sm:$0xf] %v683_v40  ;;  %686 = vst [vmem:[#allocation2 + $0x28] sm:$0xf] %v684_v41  ;;  %v644_v47 = vpop.permute.xlu1 %643  ;;  %791 = vmatprep.subr.mxu1 %v769_v44  ;;  %v642_v48 = vpop.permute.xlu0 %641 }
 0x374   : > { %v645_v49 = vsel %vm340_vm4, %v642_v48, %v644_v47  ;;  %v646_v50 = vsel %vm340_vm4, %v644_v47, %v642_v48  ;;  %792 = vmatpush1.msra.mxu1 %v768_v45 }
 0x375   : > { %v659_v51 = vmul.f32 %v652_v42, %v646_v50  ;;  %v660_v52 = vmul.f32 %v656_v43, %v645_v49 }
 0x376   : > { %v767_v55 = vld [vmem:[#allocation2 + $0x48] sm:$0xff]  ;;  %v766_v56 = vld [vmem:[#allocation2 + $0x10] sm:$0xff] }
 0x377   : > { %661 = vst [vmem:[#allocation2 + $0x70] sm:$0xf] %v659_v51  ;;  %662 = vst [vmem:[#allocation2 + $0x80] sm:$0xf] %v660_v52  ;;  %v622_v58 = vpop.permute.xlu1 %621  ;;  %793 = vmatprep.subr.mxu1 %v767_v55  ;;  %v620_v59 = vpop.permute.xlu0 %619 }
 0x378   : > { %v623_v60 = vsel %vm316_vm5, %v620_v59, %v622_v58  ;;  %v624_v61 = vsel %vm316_vm5, %v622_v58, %v620_v59  ;;  %794 = vmatpush1.msra.mxu1 %v766_v56 }
 0x379   : > { %v637_v62 = vmul.f32 %v630_v53, %v624_v61  ;;  %v638_v63 = vmul.f32 %v634_v54, %v623_v60 }
 0x37a   : > { %v765_v4 = vld [vmem:[#allocation2 + $0x28] sm:$0xff]  ;;  %v764_v8 = vld [vmem:[#allocation2 + $0x50] sm:$0xff] }
 0x37b   : > { %639 = vst [vmem:[#allocation2 + $0x20] sm:$0xf] %v637_v62  ;;  %640 = vst [vmem:[#allocation2 + $0x8] sm:$0xf] %v638_v63  ;;  %v600_v10 = vpop.permute.xlu1 %599  ;;  %795 = vmatprep.subr.mxu1 %v765_v4  ;;  %v598_v11 = vpop.permute.xlu0 %597 }
 0x37c   : > { %v601_v12 = vsel %vm292_vm6, %v598_v11, %v600_v10  ;;  %v602_v13 = vsel %vm292_vm6, %v600_v10, %v598_v11  ;;  %796 = vmatpush1.msra.mxu1 %v764_v8 }
 0x37d   : > { %v615_v15 = vmul.f32 %v608_v0, %v602_v13  ;;  %v616_v16 = vmul.f32 %v612_v3, %v601_v12  ;;  %797 = vmatprep.subr.mxu1 %v763_v14 }
 0x37e   : > { %798 = vmatpush1.msra.mxu1 %v762_v17  ;;  %v761_v20 = vld [vmem:[#allocation2 + $0x80] sm:$0xff]  ;;  %v760_v21 = vld [vmem:[#allocation2 + $0x70] sm:$0xff] }
 0x37f   : > { %617 = vst [vmem:[#allocation2 + $0x78] sm:$0xf] %v615_v15  ;;  %618 = vst [vmem:[#allocation2 + $0x58] sm:$0xf] %v616_v16  ;;  %v578_v22 = vpop.permute.xlu1 %577  ;;  %v576_v23 = vpop.permute.xlu0 %575  ;;  %799 = vmatprep.subr.mxu1 %v761_v20 }
 0x380   : > { %v579_v24 = vsel %vm269_vm7, %v576_v23, %v578_v22  ;;  %v580_v25 = vsel %vm269_vm7, %v578_v22, %v576_v23  ;;  %800 = vmatpush1.msra.mxu1 %v760_v21 }
 0x381   : > { %v593_v26 = vmul.f32 %v586_v18, %v580_v25  ;;  %v594_v27 = vmul.f32 %v590_v19, %v579_v24 }
 0x382   : > { %v759_v6 = vld [vmem:[#allocation2 + $0x8] sm:$0xff]  ;;  %v758_v28 = vld [vmem:[#allocation2 + $0x20] sm:$0xff] }
 0x383   : > { %595 = vst [vmem:[#allocation2] sm:$0xf] %v593_v26  ;;  %596 = vst [vmem:[#allocation2 + $0x38] sm:$0xf] %v594_v27  ;;  %801 = vmatprep.subr.mxu1 %v759_v6 }
 0x384   : > { %802 = vmatpush1.msra.mxu1 %v758_v28 }
 0x386   : > { %v757_v7 = vld [vmem:[#allocation2 + $0x58] sm:$0xff] }
 0x387   : > { %v756_v29 = vld [vmem:[#allocation2 + $0x78] sm:$0xff]  ;;  %803 = vmatprep.subr.mxu1 %v757_v7 }
 0x388   : > { %804 = vmatpush1.msra.mxu1 %v756_v29 }
 0x38a   : > { %v755_v30 = vld [vmem:[#allocation2 + $0x38] sm:$0xff]  ;;  %v754_v31 = vld [vmem:[#allocation2] sm:$0xff] }
 0x38b   : > { %805 = vmatprep.subr.mxu1 %v755_v30 }
 0x38c   : > { %806 = vmatpush1.msra.mxu1 %v754_v31 }
 0x38d   : > { %995 = vmatmul.mubr.msk.f32.vlgmr.msra.gmra.mxu1 %vm477_vm8, %v753_v5 }
 0x44d   : > { %v841_v32 = vpop.f32.mrf.mxu1 }
 0x44e   : > { %v846_v34 = vsel %vm552_vm9, %v841_v32, 0.0 }
 0x44f   : > { %v843_v33 = vpop.f32.mrf.mxu1 }
 0x450   : > { %v847_v35 = vsel %vm552_vm9, %v843_v33, 0.0 }
 0x451   : > { %v848_v36 = vadd.f32 %v847_v35, %v846_v34 }
 0x453   : > { %849 = vadd.xlane.f32.xlu0 %v848_v36 }
 0x4dc   : > { %v850_v37 = vpop.xlane.xlu0 %849 }
 0x4dd   : > { %v851_v38 = vmul.f32 0.00390625, %v850_v37 }
 0x4df   : > { %v852_v39 = vsub.f32 %v841_v32, %v851_v38  ;;  %v853_v40 = vsub.f32 %v843_v33, %v851_v38 }
 0x4e1   : > { %v854_v41 = vmul.f32 %v852_v39, %v852_v39  ;;  %v855_v42 = vmul.f32 %v853_v40, %v853_v40 }
 0x4e3   : > { %v856_v43 = vsel %vm552_vm9, %v854_v41, 0.0  ;;  %v857_v44 = vsel %vm552_vm9, %v855_v42, 0.0 }
 0x4e4   : > { %v858_v45 = vadd.f32 %v857_v44, %v856_v43 }
 0x4e6   : > { %859 = vadd.xlane.f32.xlu1 %v858_v45 }
 0x56f   : > { %v860_v46 = vpop.xlane.xlu1 %859 }
 0x570   : > { %v861_v47 = vmul.f32 0.00390625, %v860_v46 }
 0x572   : > { %v862_v48 = vadd.f32 1e-05, %v861_v47 }
 0x574   : > { %1084 = vrsqrt.f32 %v862_v48 }
 0x581   : > { %v1085_v49 = vpop.eup %1084 }
 0x582   : > { %v864_v50 = vmul.f32 %v1085_v49, %v852_v39  ;;  %v865_v51 = vmul.f32 %v1085_v49, %v853_v40 }
 0x584   : > { %v866_v52 = vadd.f32 %v864_v50, %v1417_v1  ;;  %v867_v53 = vadd.f32 %v865_v51, %v1425_v2 }
 0x586   : > { %v868_v54 = vmax.f32 %v866_v52, 0.0  ;;  %v869_v55 = vmax.f32 %v867_v53, 0.0 }
 0x588   : > { %v872_v56 = vcombine.low %v868_v54, %v869_v55 }
 0x58a   : > { %874 = vst [vmem:[%s240_s29] sm:$0xff] %v872_v56 }
 0x58b   : > { %1179 = shalt.err (!%p1176_p7)
}
 0x58c   : > { %s1180_s12 = scalar_lea.hbm %s888_s21, 128  ;;  %s1184_s25 = scalar_lea.hbm %s1639_s4, 256 }
 0x58d   : > { %p1181_p10 = scmp.ne.s32.totalorder %s888_s21, %s1180_s12  ;;  %p1185_p8 = scmp.lt.s32.totalorder %s888_s21, %s1639_s4 }
 0x58e   : > { %p1186_p11 = scmp.lt.s32.totalorder %s1184_s25, %s1180_s12 }
 0x58f   : > { %p1182_p13 = pnand %p1181_p10, %p1657_p2 }
 0x590   : > { %p1187_p0 = por %p1186_p11, %p1185_p8 }
 0x591   : > { %p1183_p5 = pneg %p1182_p13 }
 0x593   : > { %p1188_p1 = pnand %p1187_p0, %p1183_p5 }
 0x595   : > { %1191 = shalt.err (!%p1188_p1)
}
 0x596   : > { %1013 = dma.vmem_to_hbm [thread:$0]  (%p1657_p2), %s891_s5, 128, %s888_s21, %s876_s23  }
 0x597 PF: > { %s902_s24 = sand.u32 1, %s1226_s15   ;;  %p1658_p4 = scmp.ne.s32.totalorder %s1645_s22, 0 }
 0x598   : > { %p1659_p6 = scmp.ge.s32.totalorder %s1238_s18, 2  ;;  %s903_s28 = scalar_lea.sflag [#allocation5], %s902_s24 }
 0x59a   : > { %p1027_p9 = pnand %p1659_p6, %p1658_p4 }
 0x59c   : > { %p1028_p12 = pneg %p1027_p9 }
 0x59e   : > { %1221 = dma.done.wait (%p1028_p12), %s903_s28, 128  }
 0x59f   : > { %1223 = vsyncadd (%p1028_p12), %s903_s28, 4294967168  ;;  %p18_p3 = scmp.ge.s32.totalorder %s1352_s11, 4   ;;  %s1660_s15 = smov %s1230_s16 }
 0x5a0   : > { %s1661_s16 = smov %s1234_s17  ;;  %s1662_s17 = smov %s1368_s20 }
 0x5a1   : > { %s1663_s18 = smov %s1352_s11  ;;  %20 = sbr.rel (!%p18_p3) target bundleno = 6 (0x6), region = 97 }
 0x5a6   :  { %908 = vsyncpa [#allocation4], 1 }
 0x5a7   :  { %910 = vsyncpa [#allocation4 + $0x1], 1 }
 0x5a8   :  { %911 = vsyncpa [#allocation7], 1 }
 0x5a9   :  { %913 = vsyncpa [#allocation7 + $0x1], 1 }
 0x5aa   :  { %914 = vsyncpa [#allocation5], 1 }
 0x5ab   :  { %916 = vsyncpa [#allocation5 + $0x1], 1 }

</bundles_post_ra>
